<compile_context>
chip_gen: v7x
topology: tpu7x:2x2x1
jax: 0.10.0
libtpu: 0.0.40
codegen_flags: <defaults>
</compile_context>

<pallas_src>
import functools

import jax
import jax.numpy as jnp
from jax.experimental import pallas as pl
from jax.experimental.pallas import tpu as pltpu


# ----------------------------------------------------------------------------
# helpers
# ----------------------------------------------------------------------------
# 256 feeds the 256-wide v6e/v7x MXU full-height passes; v5e (128-wide MXU)
# gains nothing from >128 but is not hurt at these sizes.
_MAX_ROWS = 256


def _row_tile(m, max_tile=_MAX_ROWS):
    """Largest multiple of 8 that divides m and is <= max_tile (else m)."""
    if m <= 8 or m % 8 != 0:
        return m
    best = 8
    t = 8
    while t <= min(m, max_tile):
        if m % t == 0:
            best = t
        t += 8
    return best


def _cparams(*sem):
    return pltpu.CompilerParams(dimension_semantics=tuple(sem),
                                vmem_limit_bytes=64 * 1024 * 1024)


def _resident(block_shape):
    """Constant-index BlockSpec: the block never changes across the grid, so it
    is fetched once and single-buffered (pl.Buffered(1)) -- halves the VMEM
    footprint of resident weights.  Falls back gracefully if the installed
    Pallas does not expose pipeline_mode."""
    zeros = (0,) * len(block_shape)
    index_map = lambda *args: zeros
    buffered = getattr(pl, "Buffered", None)
    if buffered is not None:
        try:
            return pl.BlockSpec(block_shape, index_map,
                                pipeline_mode=buffered(1))
        except Exception:
            pass
    return pl.BlockSpec(block_shape, index_map)


# ----------------------------------------------------------------------------
# Kernel 1: plain linear  y = x @ W    (used for the patch embedding)
# ----------------------------------------------------------------------------
def _linear_kernel(x_ref, w_ref, o_ref):
    o_ref[...] = jnp.dot(x_ref[...], w_ref[...],
                         preferred_element_type=jnp.float32).astype(o_ref.dtype)


def fused_linear(x, w, out_dtype=jnp.bfloat16, max_rows=_MAX_ROWS):
    M, K = x.shape
    _, N = w.shape
    tm = _row_tile(M, max_rows)
    return pl.pallas_call(
        _linear_kernel,
        out_shape=jax.ShapeDtypeStruct((M, N), out_dtype),
        grid=(M // tm,),
        in_specs=[pl.BlockSpec((tm, K), lambda i: (i, 0)),
                  _resident((K, N))],
        out_specs=pl.BlockSpec((tm, N), lambda i: (i, 0)),
        compiler_params=_cparams("parallel"),
    )(x, w)


# ----------------------------------------------------------------------------
# Kernel 2: LayerNorm (standalone, used only for ln_pre; bf16 in / bf16 out,
#           f32 statistics)
# ----------------------------------------------------------------------------
def _layernorm_kernel(x_ref, g_ref, b_ref, o_ref, *, eps):
    x = x_ref[...].astype(jnp.float32)
    mu = jnp.mean(x, axis=-1, keepdims=True)
    var = jnp.mean(jnp.square(x - mu), axis=-1, keepdims=True)
    o_ref[...] = ((x - mu) * jax.lax.rsqrt(var + eps) * g_ref[...]
                  + b_ref[...]).astype(o_ref.dtype)


def fused_layernorm(x, g, b, eps=1e-5, out_dtype=jnp.bfloat16,
                    max_rows=_MAX_ROWS):
    M, D = x.shape
    tm = _row_tile(M, max_rows)
    return pl.pallas_call(
        functools.partial(_layernorm_kernel, eps=eps),
        out_shape=jax.ShapeDtypeStruct((M, D), out_dtype),
        grid=(M // tm,),
        in_specs=[pl.BlockSpec((tm, D), lambda i: (i, 0)),
                  _resident((1, D)), _resident((1, D))],
        out_specs=pl.BlockSpec((tm, D), lambda i: (i, 0)),
        compiler_params=_cparams("parallel"),
    )(x, g, b)


# ----------------------------------------------------------------------------
# Kernel 3: LN + linear   y = LN(x) @ W + b      (the QKV projection)
# ----------------------------------------------------------------------------
def _ln_linear_kernel(x_ref, g_ref, bln_ref, w_ref, b_ref, o_ref, *, eps):
    x = x_ref[...].astype(jnp.float32)
    mu = jnp.mean(x, axis=-1, keepdims=True)
    var = jnp.mean(jnp.square(x - mu), axis=-1, keepdims=True)
    xn = (x - mu) * jax.lax.rsqrt(var + eps) * g_ref[...] + bln_ref[...]
    y = jnp.dot(xn.astype(jnp.bfloat16), w_ref[...],
                preferred_element_type=jnp.float32) + b_ref[...]
    o_ref[...] = y.astype(o_ref.dtype)


def fused_ln_linear(x, g, b_ln, w, b, eps=1e-5, out_dtype=jnp.bfloat16,
                    max_rows=_MAX_ROWS):
    M, D = x.shape
    _, N = w.shape
    tm = _row_tile(M, max_rows)
    return pl.pallas_call(
        functools.partial(_ln_linear_kernel, eps=eps),
        out_shape=jax.ShapeDtypeStruct((M, N), out_dtype),
        grid=(M // tm,),
        in_specs=[pl.BlockSpec((tm, D), lambda i: (i, 0)),
                  _resident((1, D)), _resident((1, D)),
                  _resident((D, N)), _resident((1, N))],
        out_specs=pl.BlockSpec((tm, N), lambda i: (i, 0)),
        compiler_params=_cparams("parallel"),
    )(x, g, b_ln, w, b)


# ----------------------------------------------------------------------------
# Kernel 4: full attention block for one batch element
#   all heads (scores + softmax + context)  ->  out-proj + bias + residual
# Softmax scale is pre-folded into the Q projection; the padded-key mask is an
# additive (1, T) bias row.  Per-head contexts are written into a (T, W) VMEM
# scratch (no concat, bounded live ranges); the out-projection is one
# full-width matmul with w_out resident in VMEM.
# ----------------------------------------------------------------------------
def _attn_block_kernel(qkv_ref, msk_ref, wo_ref, bo_ref, res_ref, o_ref,
                       ctx_ref, *, heads, dh):
    width = heads * dh
    for h in range(heads):                                 # static unroll
        q = qkv_ref[:, h * dh:(h + 1) * dh]                # (T, dh) bf16
        k = qkv_ref[:, width + h * dh:width + (h + 1) * dh]
        v = qkv_ref[:, 2 * width + h * dh:2 * width + (h + 1) * dh]
        # q @ k^T as a contraction (no explicit transpose); scale pre-folded.
        s = jax.lax.dot_general(q, k, (((1,), (1,)), ((), ())),
                                preferred_element_type=jnp.float32)
        s = s + msk_ref[...]                               # additive pad mask
        s = s - jnp.max(s, axis=-1, keepdims=True)
        p = jnp.exp(s)
        p = p * pl.reciprocal(jnp.sum(p, axis=-1, keepdims=True), approx=True)
        ctx_ref[:, h * dh:(h + 1) * dh] = jnp.dot(
            p.astype(jnp.bfloat16), v,
            preferred_element_type=jnp.float32).astype(ctx_ref.dtype)
    y = jnp.dot(ctx_ref[...], wo_ref[...], preferred_element_type=jnp.float32)
    o_ref[...] = (y + bo_ref[...] + res_ref[...].astype(jnp.float32)
                  ).astype(o_ref.dtype)


def pallas_attention_block(qkv, residual, key_bias, w_out, b_out, heads, T,
                           out_dtype=jnp.bfloat16):
    """qkv: (B*T, 3W) packed projection, residual: (B*T, W) stream,
    key_bias: (1, T) additive mask.  Returns residual + attn_out_proj."""
    M, W3 = qkv.shape
    W = W3 // 3
    dh = W // heads
    B = M // T
    return pl.pallas_call(
        functools.partial(_attn_block_kernel, heads=heads, dh=dh),
        out_shape=jax.ShapeDtypeStruct((M, W), out_dtype),
        grid=(B,),
        in_specs=[pl.BlockSpec((T, W3), lambda b: (b, 0)),
                  _resident((1, T)),
                  _resident((W, W)),
                  _resident((1, W)),
                  pl.BlockSpec((T, W), lambda b: (b, 0))],
        out_specs=pl.BlockSpec((T, W), lambda b: (b, 0)),
        scratch_shapes=[pltpu.VMEM((T, W), jnp.bfloat16)],
        compiler_params=_cparams("parallel"),
    )(qkv, key_bias, w_out, b_out, residual)


# ----------------------------------------------------------------------------
# Kernel 5: whole MLP block   y = x + W2 @ GELU(W1 @ LN(x) + b1) + b2
# ----------------------------------------------------------------------------
def _ln_mlp_kernel(x_ref, g_ref, bln_ref, w1_ref, b1_ref, w2_ref, b2_ref,
                   o_ref, *, eps):
    x = x_ref[...].astype(jnp.float32)
    mu = jnp.mean(x, axis=-1, keepdims=True)
    var = jnp.mean(jnp.square(x - mu), axis=-1, keepdims=True)
    xn = (x - mu) * jax.lax.rsqrt(var + eps) * g_ref[...] + bln_ref[...]
    h = jnp.dot(xn.astype(jnp.bfloat16), w1_ref[...],
                preferred_element_type=jnp.float32) + b1_ref[...]
    h = jax.nn.gelu(h, approximate=False)                  # erf form == nn.GELU
    y = jnp.dot(h.astype(jnp.bfloat16), w2_ref[...],
                preferred_element_type=jnp.float32) + b2_ref[...]
    o_ref[...] = (x + y).astype(o_ref.dtype)


def fused_ln_mlp(x, g, b_ln, w1, b1, w2, b2, eps=1e-5, out_dtype=jnp.bfloat16,
                 max_rows=_MAX_ROWS):
    M, D = x.shape
    _, H = w1.shape
    tm = _row_tile(M, max_rows)
    return pl.pallas_call(
        functools.partial(_ln_mlp_kernel, eps=eps),
        out_shape=jax.ShapeDtypeStruct((M, D), out_dtype),
        grid=(M // tm,),
        in_specs=[pl.BlockSpec((tm, D), lambda i: (i, 0)),
                  _resident((1, D)), _resident((1, D)),
                  _resident((D, H)), _resident((1, H)),
                  _resident((H, D)), _resident((1, D))],
        out_specs=pl.BlockSpec((tm, D), lambda i: (i, 0)),
        compiler_params=_cparams("parallel"),
    )(x, g, b_ln, w1, b1, w2, b2)


# ----------------------------------------------------------------------------
# Kernel 6: tail — ln_post -> visual proj -> l2norm -> pool head -> l2norm
# ----------------------------------------------------------------------------
def _tail_kernel(x_ref, g_ref, b_ref, wp_ref, wc_ref, bc_ref, o_ref,
                 *, eps, nrm_eps):
    x = x_ref[...].astype(jnp.float32)
    mu = jnp.mean(x, axis=-1, keepdims=True)
    var = jnp.mean(jnp.square(x - mu), axis=-1, keepdims=True)
    xn = (x - mu) * jax.lax.rsqrt(var + eps) * g_ref[...] + b_ref[...]
    f = jnp.dot(xn.astype(jnp.bfloat16), wp_ref[...],
                preferred_element_type=jnp.float32)
    # torch F.normalize: x / max(||x||_2, eps)
    f = f / jnp.maximum(jnp.sqrt(jnp.sum(f * f, axis=-1, keepdims=True)), nrm_eps)
    c = jnp.dot(f.astype(jnp.bfloat16), wc_ref[...],
                preferred_element_type=jnp.float32) + bc_ref[...]
    c = c / jnp.maximum(jnp.sqrt(jnp.sum(c * c, axis=-1, keepdims=True)), nrm_eps)
    o_ref[...] = c


def fused_tail(cls_tok, g, b, w_proj, w_pool, b_pool, eps=1e-5, nrm_eps=1e-12):
    B, D = cls_tok.shape
    Dp = w_proj.shape[1]
    Dc = w_pool.shape[1]
    return pl.pallas_call(
        functools.partial(_tail_kernel, eps=eps, nrm_eps=nrm_eps),
        out_shape=jax.ShapeDtypeStruct((B, Dc), jnp.float32),
        grid=(1,),
        in_specs=[pl.BlockSpec((B, D), lambda i: (0, 0)),
                  _resident((1, D)), _resident((1, D)),
                  _resident((D, Dp)), _resident((Dp, Dc)), _resident((1, Dc))],
        out_specs=pl.BlockSpec((B, Dc), lambda i: (0, 0)),
        compiler_params=_cparams("arbitrary"),
    )(cls_tok.astype(jnp.bfloat16), g, b, w_proj, w_pool, b_pool)


# ----------------------------------------------------------------------------
# Glue (plain JAX): im2col patch extraction, CLS/pos-emb, padding, reshapes
# ----------------------------------------------------------------------------
def extract_patches_nchw(x, patch):
    """NCHW image -> (B*Np, C*P*P) im2col rows matching conv(stride=P, k=P)."""
    B, C, H, W = x.shape
    hp, wp = H // patch, W // patch
    x = x.reshape(B, C, hp, patch, wp, patch)
    x = x.transpose(0, 2, 4, 1, 3, 5)          # (B, hp, wp, C, P, P)
    return x.reshape(B * hp * wp, C * patch * patch)


def init_params(key, *, in_ch, patch, width, heads, layers, proj_dim, comp_dim,
                num_tokens):
    """Synthetic f32 'torch-like' parameters (architecture only, no checkpoint)."""
    ks = iter(jax.random.split(key, 8 + 16 * layers))
    nrm = lambda shape, s=0.02: s * jax.random.normal(next(ks), shape, jnp.float32)
    p = {
        "patch": patch, "width": width, "heads": heads,
        "w_patch": nrm((in_ch * patch * patch, width)),
        "cls_emb": nrm((width,)),
        "pos_emb": nrm((num_tokens, width)),
        "ln_pre_g": jnp.ones((width,), jnp.float32),
        "ln_pre_b": jnp.zeros((width,), jnp.float32),
        "ln_post_g": jnp.ones((width,), jnp.float32),
        "ln_post_b": jnp.zeros((width,), jnp.float32),
        "w_proj_head": nrm((width, proj_dim)),
        "w_pool": nrm((proj_dim, comp_dim)),
        "b_pool": jnp.zeros((comp_dim,), jnp.float32),
        "layers": [],
    }
    for _ in range(layers):
        p["layers"].append({
            "ln1_g": jnp.ones((width,), jnp.float32),
            "ln1_b": jnp.zeros((width,), jnp.float32),
            "w_qkv": nrm((width, 3 * width)),
            "b_qkv": jnp.zeros((3 * width,), jnp.float32),
            "w_out": nrm((width, width)),
            "b_out": jnp.zeros((width,), jnp.float32),
            "ln2_g": jnp.ones((width,), jnp.float32),
            "ln2_b": jnp.zeros((width,), jnp.float32),
            "w_fc": nrm((width, 4 * width)),
            "b_fc": jnp.zeros((4 * width,), jnp.float32),
            "w_proj": nrm((4 * width, width)),
            "b_proj": jnp.zeros((width,), jnp.float32),
        })
    return p


def prep_params(p):
    """One-time conversion of the f32 params into kernel-ready form:
    bf16 weights, f32 (1, N) biases / LN affine params, and the 1/sqrt(dh)
    softmax scale folded into the Q projection (so the attention kernel does
    no score scaling at all)."""
    W = p["width"]
    heads = p["heads"]
    scale = 1.0 / float(W // heads) ** 0.5

    bf16 = lambda w: w.astype(jnp.bfloat16)
    row = lambda b: b.reshape(1, -1).astype(jnp.float32)

    out = {
        "patch": p["patch"], "width": W, "heads": heads,
        "w_patch": bf16(p["w_patch"]),
        "cls_emb": p["cls_emb"], "pos_emb": p["pos_emb"],
        "ln_pre_g": row(p["ln_pre_g"]), "ln_pre_b": row(p["ln_pre_b"]),
        "ln_post_g": row(p["ln_post_g"]), "ln_post_b": row(p["ln_post_b"]),
        "w_proj_head": bf16(p["w_proj_head"]),
        "w_pool": bf16(p["w_pool"]), "b_pool": row(p["b_pool"]),
        "layers": [],
    }
    for lyr in p["layers"]:
        w_qkv = jnp.concatenate([lyr["w_qkv"][:, :W] * scale,
                                 lyr["w_qkv"][:, W:]], axis=1)
        b_qkv = jnp.concatenate([lyr["b_qkv"][:W] * scale,
                                 lyr["b_qkv"][W:]], axis=0)
        out["layers"].append({
            "ln1_g": row(lyr["ln1_g"]), "ln1_b": row(lyr["ln1_b"]),
            "w_qkv": bf16(w_qkv), "b_qkv": row(b_qkv),
            "w_out": bf16(lyr["w_out"]), "b_out": row(lyr["b_out"]),
            "ln2_g": row(lyr["ln2_g"]), "ln2_b": row(lyr["ln2_b"]),
            "w_fc": bf16(lyr["w_fc"]), "b_fc": row(lyr["b_fc"]),
            "w_proj": bf16(lyr["w_proj"]), "b_proj": row(lyr["b_proj"]),
        })
    return out


def clip_encoder_forward(params, x, seq_pad_multiple=8):
    """params: output of prep_params.  x: (B, C, H, W) NCHW float32.
    Returns (B, comp_dim) L2-normalized embeddings."""
    B = x.shape[0]
    patch = params["patch"]
    width = params["width"]
    heads = params["heads"]

    # ---- patch embedding (conv stride=k=patch as im2col + matmul) ---------
    patches = extract_patches_nchw(x, patch).astype(jnp.bfloat16)
    tok = fused_linear(patches, params["w_patch"])            # (B*Np, width)
    npatch = patches.shape[0] // B
    tok = tok.reshape(B, npatch, width).astype(jnp.float32)

    # ---- CLS token + positional embedding, pad T (sublane alignment) ------
    # NOTE: on v6e/v7x padding T up to a multiple of 128 can be worth it for a
    # fully lane-dense score tile when the waste is small; 8 keeps waste low.
    cls = jnp.broadcast_to(params["cls_emb"], (B, 1, width))
    h = jnp.concatenate([cls, tok], axis=1) + params["pos_emb"][None]
    t_real = npatch + 1
    T = ((t_real + seq_pad_multiple - 1) // seq_pad_multiple) * seq_pad_multiple
    if T != t_real:
        h = jnp.pad(h, ((0, 0), (0, T - t_real), (0, 0)))
    # additive key mask: 0 for real tokens, -1e30 for padded key positions
    key_bias = jnp.where(jnp.arange(T) < t_real, 0.0, -1e30
                         ).astype(jnp.float32).reshape(1, T)

    # ---- pre-LN (bf16 in / bf16 out, stats in f32) -------------------------
    hf = fused_layernorm(h.reshape(B * T, width).astype(jnp.bfloat16),
                         params["ln_pre_g"], params["ln_pre_b"])

    # ---- transformer layers -------------------------------------------------
    # Residual stream hf kept in bf16 in HBM (noted: differs from fp32 torch
    # rounding; acceptable for inference).
    for lyr in params["layers"]:
        # LN1 + QKV projection (one kernel, packed (B*T, 3W) output so the
        # QKV GEMM stays full MXU width).
        qkv = fused_ln_linear(hf, lyr["ln1_g"], lyr["ln1_b"],
                              lyr["w_qkv"], lyr["b_qkv"])
        # All heads + out-proj + bias + residual, one kernel per batch elem.
        hf = pallas_attention_block(qkv, hf, key_bias,
                                    lyr["w_out"], lyr["b_out"], heads, T)
        # LN2 + FC + GELU + proj + residual, one kernel.
        hf = fused_ln_mlp(hf, lyr["ln2_g"], lyr["ln2_b"],
                          lyr["w_fc"], lyr["b_fc"],
                          lyr["w_proj"], lyr["b_proj"])

    # ---- CLS token -> ln_post -> proj -> l2norm -> pool -> l2norm ----------
    cls_out = hf.reshape(B, T, width)[:, 0, :]
    return fused_tail(cls_out, params["ln_post_g"], params["ln_post_b"],
                      params["w_proj_head"], params["w_pool"], params["b_pool"])


# ----------------------------------------------------------------------------
if __name__ == "__main__":
    key = jax.random.PRNGKey(0)
    k_params, k_x = jax.random.split(key)

    # Small synthetic CLIP-ViT config
    B, C, H, W_IMG = 2, 3, 16, 16
    PATCH, WIDTH, HEADS, LAYERS = 4, 32, 4, 2
    PROJ_DIM, COMP_DIM = 32, 16
    NUM_TOKENS = (H // PATCH) * (W_IMG // PATCH) + 1

    raw_params = init_params(
        k_params, in_ch=C, patch=PATCH, width=WIDTH, heads=HEADS, layers=LAYERS,
        proj_dim=PROJ_DIM, comp_dim=COMP_DIM, num_tokens=NUM_TOKENS)
    params = prep_params(raw_params)   # one-time cast/reshape/scale-fold

    x = jax.random.normal(k_x, (B, C, H, W_IMG), jnp.float32)

    out = jax.block_until_ready(clip_encoder_forward(params, x))

    assert out.shape == (B, COMP_DIM)
    # outputs are L2-normalized rows (normalization done in f32 inside kernel)
    assert bool(jnp.allclose(jnp.linalg.norm(out, axis=-1), 1.0, atol=1e-3))
    print("KERNEL_OK")
</pallas_src>

<mosaic_0001>
module attributes {stable_mosaic.version = 11 : i64} {
  func.func @_linear_kernel(%arg0: i32, %arg1: memref<32x48xbf16, #tpu.memory_space<vmem>>, %arg2: memref<48x32xbf16, #tpu.memory_space<vmem>>, %arg3: memref<32x32xbf16, #tpu.memory_space<vmem>>) attributes {dimension_semantics = [#tpu.dimension_semantics<parallel>], iteration_bounds = array<i64: 1>, scalar_prefetch = 0 : i64, scratch_operands = 0 : i64, tpu.core_type = #tpu.core_type<tc>, window_params = [{transform_indices = @transform_0, window_bounds = array<i64: 32, 48>}, {pipeline_mode = #tpu.pipeline_mode<synchronous>, transform_indices = @transform_1, window_bounds = array<i64: 48, 32>}, {transform_indices = @transform_2, window_bounds = array<i64: 32, 32>}]} {
    %c0 = arith.constant 0 : index
    %c0_0 = arith.constant 0 : index
    %0 = vector.load %arg1[%c0, %c0_0] : memref<32x48xbf16, #tpu.memory_space<vmem>>, vector<32x48xbf16>
    %c0_1 = arith.constant 0 : index
    %c0_2 = arith.constant 0 : index
    %1 = vector.load %arg2[%c0_1, %c0_2] : memref<48x32xbf16, #tpu.memory_space<vmem>>, vector<48x32xbf16>
    %cst = arith.constant dense<0.000000e+00> : vector<32x32xf32>
    %2 = tpu.matmul %0, %1, %cst {dimension_numbers = #tpu.dot_dimension_numbers<[1], [0], [0], [1], [0, 0, 1, 1], [], []>} : vector<32x48xbf16>, vector<48x32xbf16>, vector<32x32xf32> -> vector<32x32xf32>
    %3 = arith.truncf %2 : vector<32x32xf32> to vector<32x32xbf16>
    %c0_3 = arith.constant 0 : index
    %c0_4 = arith.constant 0 : index
    %4 = vector.load %arg3[%c0_3, %c0_4] : memref<32x32xbf16, #tpu.memory_space<vmem>>, vector<32x32xbf16>
    tpu.vector_store %arg3[%c0_3, %c0_4], %3 {strides = array<i32>} : memref<32x32xbf16, #tpu.memory_space<vmem>>, vector<32x32xbf16>,
    return
  }
  func.func @transform_0(%arg0: i32) -> (i32, i32) {
    %c0_i32 = arith.constant 0 : i32
    %c0_i32_0 = arith.constant 0 : i32
    return %arg0, %c0_i32 : i32, i32
  }
  func.func @transform_1(%arg0: i32) -> (i32, i32) {
    %c0_i32 = arith.constant 0 : i32
    %c0_i32_0 = arith.constant 0 : i32
    %c0_i32_1 = arith.constant 0 : i32
    return %c0_i32, %c0_i32_0 : i32, i32
  }
  func.func @transform_2(%arg0: i32) -> (i32, i32) {
    %c0_i32 = arith.constant 0 : i32
    %c0_i32_0 = arith.constant 0 : i32
    return %arg0, %c0_i32 : i32, i32
  }
}

</mosaic_0001>

<bundles_post_ra>
// kernel: tpu_custom_call.1
= control target key start
LH: loop header
LB: loop body
LE: loop exit
PB: predicated region body
PF: predicated region fallthrough
CT: control target
= control target key end

     0   :  { %7 = vsyncpa [#allocation3], 0  ;;  %s351_s0 = inlined_call_operand.hbm [shape: bf16[32,48], index: 0, kind: input, shape index: {}]   ;;  %s352_s1 = inlined_call_operand.hbm [shape: bf16[48,32], index: 1, kind: input, shape index: {}]   ;;  %s353_s2 = inlined_call_operand.hbm [shape: bf16[32,32], index: 2, kind: output, shape index: {}]  }
   0x1   :  { %8 = vsyncpa [#allocation6], 0 }
   0x2   :  { %9 = vsyncpa [#allocation4], 0  ;;  %s286_s9 = smov [#allocation2]   ;;  %s214_s13 = scalar_lea.hbm %s351_s0, 256 }
   0x3   :  { %s15_s10 = sshll.u32 %s286_s9, 4  ;;  %p215_p0 = scmp.ne.s32.totalorder %s351_s0, %s214_s13  ;;  %s16_s10 = int_to_ptr.vmem [resolvable:$true] %s15_s10 }
   0x4   :  { %p218_p1 = scmp.lt.u32.totalorder %s214_s13, %s351_s0 }
   0x6   :  { %p220_p2 = pnand %p218_p1, %p215_p0 }
   0x8   :  { %223 = shalt.err (!%p220_p2)
}
   0x9   :  { %s224_s18 = scalar_lea.vmem %s16_s10, 256  ;;  %p229_p4 = scmp.lt.s32.totalorder %s16_s10, %s16_s10 }
   0xa   :  { %p225_p3 = scmp.ne.s32.totalorder %s16_s10, %s224_s18  ;;  %p230_p5 = scmp.lt.s32.totalorder %s224_s18, %s224_s18 }
   0xc   :  { %p231_p6 = por %p230_p5, %p229_p4 }
   0xe   :  { %p232_p7 = pnand %p231_p6, %p225_p3 }
  0x10   :  { %235 = shalt.err (!%p232_p7)
}
  0x11   :  { %s287_s19 = smov 64   ;;  %s288_s20 = smov 4  }
  0x12   :  { %21 = dma.hbm_to_vmem [thread:$0]  %s351_s0, 256, %s16_s10, [#allocation3], %s287_s19, %s287_s19, %s288_s20  }
  0x13   :  { %s289_s23 = smov [#allocation5]   ;;  %s236_s27 = scalar_lea.hbm %s352_s1, 384 }
  0x14   :  { %s27_s24 = sshll.u32 %s289_s23, 4  ;;  %p237_p8 = scmp.ne.s32.totalorder %s352_s1, %s236_s27  ;;  %s28_s24 = int_to_ptr.vmem [resolvable:$true] %s27_s24 }
  0x15   :  { %p240_p9 = scmp.lt.u32.totalorder %s236_s27, %s352_s1 }
  0x17   :  { %p242_p10 = pnand %p240_p9, %p237_p8 }
  0x19   :  { %245 = shalt.err (!%p242_p10)
}
  0x1a   :  { %s246_s4 = scalar_lea.vmem %s28_s24, 384  ;;  %p251_p12 = scmp.lt.s32.totalorder %s28_s24, %s28_s24 }
  0x1b   :  { %p247_p11 = scmp.ne.s32.totalorder %s28_s24, %s246_s4  ;;  %p252_p13 = scmp.lt.s32.totalorder %s246_s4, %s246_s4 }
  0x1d   :  { %p253_p0 = por %p252_p13, %p251_p12 }
  0x1f   :  { %p254_p1 = pnand %p253_p0, %p247_p11 }
  0x21   :  { %257 = shalt.err (!%p254_p1)
}
  0x22   :  { %33 = dma.hbm_to_vmem [thread:$0]  %s352_s1, 384, %s28_s24, [#allocation6], %s287_s19, %s287_s19, %s288_s20  }
  0x23   :  { %280 = dma.done.wait [#allocation3], 256  }
  0x24   :  { %281 = vsyncadd [#allocation3], 4294967040 }
  0x25   :  { %282 = dma.done.wait [#allocation6], 384  }
  0x26   :  { %283 = vsyncadd [#allocation6], 4294966912  ;;  %v209_v0 = vld [vmem:[#allocation5] sm:$0xff]   ;;  %v210_v1 = vld [vmem:[#allocation5 + $0x8] sm:$0xff]   ;;  %vm79_vm0 = vcmask 392192   ;;  %vm151_vm1 = vcmask 257024  }
  0x27   :  { %194 = vmatprep.subr.bf16.mxu0 %v209_v0  ;;  %v212_v2 = vld [vmem:[#allocation2] sm:$0xff]   ;;  %v213_v4 = vld [vmem:[#allocation2 + $0x8] sm:$0xff]   ;;  %s290_s1 = smov [#allocation7]  }
  0x28   :  { %195 = vmatpush3.bf16.msra.mxu0 %v209_v0  ;;  %v211_v3 = vld [vmem:[#allocation5 + $0x10] sm:$0xff]   ;;  %200 = vmatprep.mubr.msk.bf16.mxu0 %vm79_vm0, %v212_v2  ;;  %s161_s6 = sshll.u32 %s290_s1, 4  ;;  %s162_s6 = int_to_ptr.vmem [resolvable:$true] %s161_s6 }
  0x29   :  { %196 = vmatprep.subr.bf16.mxu0 %v210_v1  ;;  %s258_s7 = scalar_lea.vmem %s162_s6, 256  ;;  %p263_p3 = scmp.lt.s32.totalorder %s162_s6, %s162_s6 }
  0x2a   :  { %p259_p2 = scmp.ne.s32.totalorder %s162_s6, %s258_s7  ;;  %p264_p4 = scmp.lt.s32.totalorder %s258_s7, %s258_s7 }
  0x2c   :  { %197 = vmatpush3.bf16.msra.mxu0 %v210_v1  ;;  %p265_p5 = por %p264_p4, %p263_p3 }
  0x2d   :  { %198 = vmatprep.subr.bf16.mxu0 %v211_v3 }
  0x2e   :  { %p266_p6 = pnand %p265_p5, %p259_p2 }
  0x30   :  { %199 = vmatpush3.bf16.msra.mxu0 %v211_v3 }
  0x33   :  { %201 = vmatmul.mubr.msk.bf16.vlgmr.msra.gmra.mrb[0].mxu0 %vm79_vm0, %v213_v4 }
 0x106   :  { %v202_v5 = vpop.f32.mrb[0].mxu0 }
 0x107   :  { %v187_v6 = vpack.c.bf16 %v202_v5, %v202_v5  ;;  %v120_v7 = vpop.f32.mrb[1].mxu0 }
 0x108   :  { %v185_v8 = vpack.c.bf16 %v120_v7, %v120_v7  ;;  %v203_v9 = vpop.f32.mrb[2].mxu0 }
 0x109   :  { %154 = vst.msk [vmem:[#allocation7 + $0x8] sm:$0xf] %vm151_vm1, %v187_v6  ;;  %v188_v10 = vpack.c.bf16 %v203_v9, %v203_v9  ;;  %v123_v11 = vpop.f32.mrb[3].mxu0 }
 0x10a   :  { %152 = vst.msk [vmem:[#allocation7] sm:$0xf] %vm151_vm1, %v185_v8  ;;  %v186_v12 = vpack.c.bf16 %v123_v11, %v123_v11 }
 0x10b   :  { %155 = vst.msk [vmem:[#allocation7 + $0xc] sm:$0xf] %vm151_vm1, %v188_v10 }
 0x10c   :  { %153 = vst.msk [vmem:[#allocation7 + $0x4] sm:$0xf] %vm151_vm1, %v186_v12 }
 0x10d   :  { %269 = shalt.err (!%p266_p6)
}
 0x10e   :  { %s270_s10 = scalar_lea.hbm %s353_s2, 256 }
 0x10f   :  { %p271_p7 = scmp.ne.s32.totalorder %s353_s2, %s270_s10  ;;  %p274_p8 = scmp.lt.u32.totalorder %s270_s10, %s353_s2 }
 0x111   :  { %p276_p9 = pnand %p274_p8, %p271_p7 }
 0x113   :  { %279 = shalt.err (!%p276_p9)
}
 0x114   :  { %167 = dma.vmem_to_hbm [thread:$0]  %s162_s6, 256, %s353_s2, [#allocation4], %s287_s19, %s287_s19, %s288_s20  }
 0x115   :  { %284 = dma.done.wait [#allocation4], 256  }
 0x116   :  { %285 = vsyncadd [#allocation4], 4294967040 }
 0x117   :  { %171 = vsyncpa [#allocation3], 1 }
 0x118   :  { %172 = vsyncpa [#allocation6], 1 }
 0x119   :  { %173 = vsyncpa [#allocation4], 1 }

</bundles_post_ra>
